<compile_context>
chip_gen: v7x
topology: tpu7x:2x2x1
jax: 0.10.0
libtpu: 0.0.40
codegen_flags: <defaults>
</compile_context>

<pallas_src>
import functools

import jax
import jax.numpy as jnp
from jax import lax
from jax.experimental import pallas as pl
from jax.experimental.pallas import tpu as pltpu  # noqa: F401  (TPU backend)

SUB = 8     # f32 sublane tile
LANE = 128  # lane tile


def _attn_kernel(x_ref, w_ref, r_ref, o_ref, *, n_valid, k_valid, div, drop_p):
    x = x_ref[...]  # (SUB, LANE) f32; rows >= n_valid and lanes >= D are zero
    w = w_ref[...]  # (SUB, LANE) f32; rows >= k_valid and lanes >= D are zero

    # qk = x @ w^T : contract the feature (lane) dim of both operands -> MXU.
    qk = lax.dot_general(x, w, (((1,), (1,)), ((), ())),
                         preferred_element_type=jnp.float32)       # (SUB, SUB)
    scaled = qk * (1.0 / div)

    # Mask padded "key" columns before the softmax.
    col = lax.broadcasted_iota(jnp.int32, scaled.shape, 1)
    scaled = jnp.where(col < k_valid, scaled, -jnp.inf)

    # Numerically-stable softmax over the last dim (padded cols -> exp(-inf)=0).
    m = jnp.max(scaled, axis=-1, keepdims=True)
    e = jnp.exp(scaled - m)
    p = e / jnp.sum(e, axis=-1, keepdims=True)

    # Inverted-scale dropout (training semantics of F.dropout).  Uniform
    # randoms are generated in the wrapper (portable; no TPU-only PRNG here).
    if drop_p > 0.0:
        keep = r_ref[...] >= drop_p                   # P(keep) = 1 - drop_p
        p = jnp.where(keep, p * (1.0 / (1.0 - drop_p)), 0.0)

    # output = dropout_qk @ x1   (plain (M,K)@(K,N) contraction on the MXU;
    # padded cols of p are 0 and padded rows of x are 0, so padding is inert).
    out = lax.dot_general(p, x, (((1,), (0,)), ((), ())),
                          preferred_element_type=jnp.float32)      # (SUB, LANE)

    # Zero the padded rows so the padded region of the output block is clean.
    row = lax.broadcasted_iota(jnp.int32, out.shape, 0)
    o_ref[...] = jnp.where(row < n_valid, out, 0.0)


@functools.partial(jax.jit, static_argnames=("div", "dropout_p"))
def _forward(x1, w2, key, *, div, dropout_p):
    n, d = x1.shape
    k = w2.shape[0]
    xp = jnp.zeros((SUB, LANE), jnp.float32).at[:n, :d].set(x1.astype(jnp.float32))
    wp = jnp.zeros((SUB, LANE), jnp.float32).at[:k, :d].set(w2.astype(jnp.float32))
    rand = jax.random.uniform(key, (SUB, SUB), dtype=jnp.float32)

    kernel = functools.partial(_attn_kernel, n_valid=n, k_valid=k,
                               div=float(div), drop_p=float(dropout_p))

    # Single whole-array invocation: no grid, default full-array BlockSpecs
    # (everything lives in one VMEM tile per operand).
    out = pl.pallas_call(
        kernel,
        out_shape=jax.ShapeDtypeStruct((SUB, LANE), jnp.float32),
    )(xp, wp, rand)
    return out[:n, :d]


def model_forward(x1, w, *, div, dropout_p, key):
    """x1: (N, D) f32.  w: (D, D, 1, 1) f32 (PyTorch weight; trailing (1,1) dims no-op)."""
    n, d = x1.shape
    w2 = w.reshape(w.shape[0], w.shape[1])  # transpose(-2,-1) on the (1,1) tail is a no-op
    k = w2.shape[0]
    assert w2.shape[1] == d and k == n, "attention pattern requires #keys == N"
    return _forward(x1, w2, key, div=float(div), dropout_p=float(dropout_p))


if __name__ == "__main__":
    key = jax.random.PRNGKey(0)
    kx, kw, kd = jax.random.split(key, 3)

    # Shapes implied by the module: w is (3,3,1,1); x1 gets N == 3 rows so the
    # final softmax_qk @ x1 is well-defined (the original (1,3) is shape-invalid).
    N, D = 3, 3
    x1 = jax.random.normal(kx, (N, D), dtype=jnp.float32)
    w = jax.random.normal(kw, (D, D, 1, 1), dtype=jnp.float32)

    cfg_div = 2.0        # config.div
    cfg_dropout = 0.1    # config.dropout

    out = model_forward(x1, w, div=cfg_div, dropout_p=cfg_dropout, key=kd)
    out = jax.block_until_ready(out)
    assert out.shape == (N, D) and out.dtype == jnp.float32
    assert bool(jnp.all(jnp.isfinite(out)))
    print("KERNEL_OK")
</pallas_src>

<mosaic_0001>
module attributes {stable_mosaic.version = 11 : i64} {
  func.func @_attn_kernel(%arg0: memref<8x128xf32, #tpu.memory_space<vmem>>, %arg1: memref<8x128xf32, #tpu.memory_space<vmem>>, %arg2: memref<8x8xf32, #tpu.memory_space<vmem>>, %arg3: memref<8x128xf32, #tpu.memory_space<vmem>>) attributes {dimension_semantics = [], scalar_prefetch = 0 : i64, scratch_operands = 0 : i64, tpu.core_type = #tpu.core_type<tc>} {
    %c0 = arith.constant 0 : index
    %c0_0 = arith.constant 0 : index
    %0 = vector.load %arg0[%c0, %c0_0] : memref<8x128xf32, #tpu.memory_space<vmem>>, vector<8x128xf32>
    %c0_1 = arith.constant 0 : index
    %c0_2 = arith.constant 0 : index
    %1 = vector.load %arg1[%c0_1, %c0_2] : memref<8x128xf32, #tpu.memory_space<vmem>>, vector<8x128xf32>
    %cst = arith.constant dense<0.000000e+00> : vector<8x8xf32>
    %2 = tpu.matmul %0, %1, %cst {dimension_numbers = #tpu.dot_dimension_numbers<[1], [1], [0], [0], [0, 0, 1, 0], [], []>} : vector<8x128xf32>, vector<8x128xf32>, vector<8x8xf32> -> vector<8x8xf32>
    %cst_3 = arith.constant 5.000000e-01 : f32
    %3 = vector.broadcast %cst_3 : f32 to vector<8x8xf32>
    %4 = arith.mulf %2, %3 : vector<8x8xf32>
    %5 = tpu.iota {dimensions = array<i32: 1>} : vector<8x8xi32>
    %c3_i32 = arith.constant 3 : i32
    %6 = vector.broadcast %c3_i32 : i32 to vector<8x8xi32>
    %7 = arith.cmpi slt, %5, %6 : vector<8x8xi32>
    %cst_4 = arith.constant 0xFF800000 : f32
    %8 = vector.broadcast %cst_4 : f32 to vector<8x8xf32>
    %9 = arith.select %7, %4, %8 : vector<8x8xi1>, vector<8x8xf32>
    %cst_5 = arith.constant dense<0xFF800000> : vector<8xf32>
    %10 = vector.multi_reduction <maximumf>, %9, %cst_5 [1] : vector<8x8xf32> to vector<8xf32>
    %11 = vector.shape_cast %10 : vector<8xf32> to vector<8x1xf32>
    %12 = vector.broadcast %11 : vector<8x1xf32> to vector<8x8xf32>
    %13 = arith.subf %9, %12 : vector<8x8xf32>
    %14 = math.exp %13 : vector<8x8xf32>
    %cst_6 = arith.constant dense<0.000000e+00> : vector<8xf32>
    %15 = vector.multi_reduction <add>, %14, %cst_6 [1] : vector<8x8xf32> to vector<8xf32>
    %16 = vector.shape_cast %15 : vector<8xf32> to vector<8x1xf32>
    %17 = vector.broadcast %16 : vector<8x1xf32> to vector<8x8xf32>
    %18 = arith.divf %14, %17 : vector<8x8xf32>
    %c0_7 = arith.constant 0 : index
    %c0_8 = arith.constant 0 : index
    %19 = vector.load %arg2[%c0_7, %c0_8] : memref<8x8xf32, #tpu.memory_space<vmem>>, vector<8x8xf32>
    %cst_9 = arith.constant 1.000000e-01 : f32
    %20 = vector.broadcast %cst_9 : f32 to vector<8x8xf32>
    %21 = arith.cmpf oge, %19, %20 : vector<8x8xf32>
    %cst_10 = arith.constant 1.11111116 : f32
    %22 = vector.broadcast %cst_10 : f32 to vector<8x8xf32>
    %23 = arith.mulf %18, %22 : vector<8x8xf32>
    %cst_11 = arith.constant 0.000000e+00 : f32
    %24 = vector.broadcast %cst_11 : f32 to vector<8x8xf32>
    %25 = arith.select %21, %23, %24 : vector<8x8xi1>, vector<8x8xf32>
    %cst_12 = arith.constant dense<0.000000e+00> : vector<8x128xf32>
    %26 = tpu.matmul %25, %0, %cst_12 {dimension_numbers = #tpu.dot_dimension_numbers<[1], [0], [0], [1], [0, 0, 1, 1], [], []>} : vector<8x8xf32>, vector<8x128xf32>, vector<8x128xf32> -> vector<8x128xf32>
    %27 = tpu.iota {dimensions = array<i32: 0>} : vector<8x128xi32>
    %c3_i32_13 = arith.constant 3 : i32
    %28 = vector.broadcast %c3_i32_13 : i32 to vector<8x128xi32>
    %29 = arith.cmpi slt, %27, %28 : vector<8x128xi32>
    %cst_14 = arith.constant 0.000000e+00 : f32
    %30 = vector.broadcast %cst_14 : f32 to vector<8x128xf32>
    %31 = arith.select %29, %26, %30 : vector<8x128xi1>, vector<8x128xf32>
    %c0_15 = arith.constant 0 : index
    %c0_16 = arith.constant 0 : index
    %32 = vector.load %arg3[%c0_15, %c0_16] : memref<8x128xf32, #tpu.memory_space<vmem>>, vector<8x128xf32>
    tpu.vector_store %arg3[%c0_15, %c0_16], %31 {strides = array<i32>} : memref<8x128xf32, #tpu.memory_space<vmem>>, vector<8x128xf32>,
    return
  }
}

</mosaic_0001>

<bundles_post_ra>
// kernel: _forward.1
= control target key start
LH: loop header
LB: loop body
LE: loop exit
PB: predicated region body
PF: predicated region fallthrough
CT: control target
= control target key end

     0   :  { %v210_v0 = vmov 0.0   ;;  %vm211_vm0 = vmmov 0   ;;  %v87_v3 = vlaneseq  ;;  %vm91_vm2 = vcmask 64512   ;;  %s247_s1 = inlined_call_operand.vmem [shape: f32[8,128], index: 1, kind: input, shape index: {}]   ;;  %s248_s0 = inlined_call_operand.vmem [shape: f32[8,128], index: 0, kind: input, shape index: {}]   ;;  %s249_s2 = inlined_call_operand.vmem [shape: f32[8,8], index: 2, kind: input, shape index: {}]   ;;  %s250_s3 = inlined_call_operand.vmem [shape: f32[8,128], index: 3, kind: output, shape index: {}]  }
   0x1   :  { %194 = vmatprep.subr.mxu0 %v210_v0  ;;  %v15_v1 = vld [vmem:[%s247_s1] sm:$0xff]  ;;  %196 = vmatprep.mubr.msk.f32.mxu0 %vm211_vm0, %v210_v0 }
   0x2   :  { %195 = vmatpush3.xpose.msra.mxu0 %v15_v1  ;;  %v14_v2 = vld [vmem:[%s248_s0] sm:$0xff]  ;;  %199 = vmatprep.subr.mxu1 %v210_v0  ;;  %v88_v4 = vand.u32 127, %v87_v3  ;;  %v181_v21 = vshrl.u32 %v87_v3, 7 }
   0x3   :  { %200 = vmatpush3.msra.mxu1 %v14_v2  ;;  %201 = vmatprep.mubr.msk.f32.mxu1 %vm211_vm0, %v210_v0  ;;  %v103_v16 = vld [vmem:[%s249_s2] sm:$0xff] }
   0x4   :  { %vm89_vm1 = vcmp.lt.s32.totalorder %v88_v4, 3  ;;  %vm104_vm3 = vcmp.ge.f32.partialorder %v103_v16, 0.1  ;;  %vm182_vm4 = vcmp.lt.s32.totalorder %v181_v21, 3 }
   0x5   :  { %197 = vmatmul.mubr.f32.vlgmr.msra.gmra.mrb[0].mxu0 %v14_v2 }
  0xd8   :  { %v82_v5 = vpop.f32.mrb[0].mxu0 }
  0xd9   :  { %v86_v6 = vmul.f32 0.5, %v82_v5  ;;  %v198_v7 = vpop.f32.mrb[1].mxu0 }
  0xdb   :  { %v90_v8 = vsel %vm89_vm1, %v86_v6, -inf }
  0xdc   :  { %v92_v9 = vsel %vm91_vm2, %v90_v8, -inf }
  0xdd   :  { %93 = vmax.xlane.f32.xlu0 %v92_v9 }
 0x16a   :  { %v94_v10 = vpop.xlane.xlu0 %93 }
 0x16b   :  { %v95_v11 = vsub.f32 %v90_v8, %v94_v10 }
 0x16d   :  { %v96_v12 = vmul.f32 1.442695, %v95_v11 }
 0x16f   :  { %206 = vpow2.f32 %v96_v12 }
 0x179   :  { %v207_v13 = vpop.eup %206 }
 0x17a   :  { %v98_v14 = vsel %vm91_vm2, %v207_v13, 0.0 }
 0x17b   :  { %99 = vadd.xlane.f32.xlu0 %v98_v14 }
 0x208   :  { %v100_v15 = vpop.xlane.xlu0 %99 }
 0x209   :  { %208 = vrcp.f32 %v100_v15 }
 0x213   :  { %v209_v17 = vpop.eup %208 }
 0x214   :  { %v102_v18 = vmul.f32 %v209_v17, %v207_v13 }
 0x216   :  { %v105_v19 = vmul.f32 1.1111112, %v102_v18 }
 0x218   :  { %v106_v20 = vsel %vm104_vm3, %v105_v19, 0.0 }
 0x219   :  { %202 = vmatmul.mubr.msk.f32.vlgmr.msra.gmra.mrb[0].mxu1 %vm91_vm2, %v106_v20 }
 0x2ec   :  { %v176_v22 = vpop.f32.mrb[0].mxu1 }
 0x2ed   :  { %v183_v23 = vsel %vm182_vm4, %v176_v22, 0.0  ;;  %v203_v24 = vpop.f32.mrb[1].mxu1 }
 0x2ee   :  { %184 = vst [vmem:[%s250_s3] sm:$0xff] %v183_v23 }

</bundles_post_ra>
